<compile_context>
chip_gen: v7x
topology: tpu7x:2x2x1
jax: 0.10.0
libtpu: 0.0.40
codegen_flags: <defaults>
</compile_context>

<pallas_src>
import jax
import jax.numpy as jnp
from jax.experimental import pallas as pl
from jax.experimental.pallas import tpu as pltpu

# CartPole-like defaults (env.observation_space.shape[0]=4, env.action_space.n=2)
N_STATES = 4
HIDDEN = 60
N_ACTIONS = 2

LANE = 128      # batch tile must be a multiple of the 128-wide lane axis
MAX_TB = 2048   # largest single batch tile (~0.5 MB working set incl. hidden)


def net_kernel(x_ref, w1_ref, b1_ref, w2_ref, b2_ref, o_ref):
    """Transposed forward pass for one batch tile.

    x_ref : (N_STATES, tb)      lane-dense batch tile
    w1_ref: (HIDDEN, N_STATES)  PyTorch layout (out, in), VMEM-resident
    b1_ref: (HIDDEN, 1)
    w2_ref: (N_ACTIONS, HIDDEN)
    b2_ref: (N_ACTIONS, 1)
    o_ref : (N_ACTIONS, tb)
    """
    x = x_ref[...]                                    # (N_STATES, tb)
    w1 = w1_ref[...]                                  # (HIDDEN, N_STATES)

    # fc1: K = N_STATES = 4 is pure MXU pipeline latency, so do it as 4
    # unrolled VPU broadcast-FMAs (outer-product accumulate); bias is the
    # accumulator init (no separate broadcast+add).
    h = b1_ref[...] + w1[:, 0:1] * x[0:1, :]          # (HIDDEN, tb)
    for k in range(1, N_STATES):
        h = h + w1[:, k:k + 1] * x[k:k + 1, :]
    h = jnp.maximum(h, 0.0)                           # ReLU

    # Output layer (K = HIDDEN = 60) on the MXU; lane-dense over the batch,
    # so the store is a full-width unmasked vst.
    y = jnp.dot(w2_ref[...], h, preferred_element_type=jnp.float32)
    o_ref[...] = (y + b2_ref[...]).astype(o_ref.dtype)


def _round_up(n, m):
    return ((n + m - 1) // m) * m


def _choose_tiling(batch):
    """Pick (tb, n_tiles).  One big lane-dense tile for typical DQN batches
    (single grid step); otherwise equal tiles of at most MAX_TB so long
    batches stream and v7x's two TensorCores get balanced 'parallel' steps."""
    bp = _round_up(max(batch, LANE), LANE)
    if bp <= MAX_TB:
        return bp, 1
    n_tiles = pl.cdiv(bp, MAX_TB)
    tb = _round_up(pl.cdiv(bp, n_tiles), LANE)
    n_tiles = pl.cdiv(bp, tb)
    return tb, n_tiles


@jax.jit
def net_forward(x, w1, b1, w2, b2):
    """x: (B, N_STATES).  Weights in PyTorch layout:
    w1 (HIDDEN, N_STATES), b1 (HIDDEN,), w2 (N_ACTIONS, HIDDEN), b2 (N_ACTIONS,).
    Returns (B, N_ACTIONS) f32."""
    B = x.shape[0]
    tb, n_tiles = _choose_tiling(B)
    Bp = tb * n_tiles

    # Batch onto the lane axis; single fused pad (no zeros + scatter).
    x_t = jnp.pad(x.astype(jnp.float32).T, ((0, 0), (0, Bp - B)))
    b1_c = b1.reshape(HIDDEN, 1).astype(jnp.float32)
    b2_c = b2.reshape(N_ACTIONS, 1).astype(jnp.float32)

    # Deeper input buffering only pays off on a long streaming grid.
    x_spec_kwargs = {}
    if n_tiles >= 4:
        x_spec_kwargs["pipeline_mode"] = pl.Buffered(3)
    x_spec = pl.BlockSpec((N_STATES, tb), lambda i: (0, i), **x_spec_kwargs)

    y_t = pl.pallas_call(
        net_kernel,
        out_shape=jax.ShapeDtypeStruct((N_ACTIONS, Bp), jnp.float32),
        grid=(n_tiles,),
        in_specs=[
            x_spec,                                               # x tile (pipelined)
            pl.BlockSpec((HIDDEN, N_STATES), lambda i: (0, 0)),   # w1 resident
            pl.BlockSpec((HIDDEN, 1), lambda i: (0, 0)),          # b1 resident
            pl.BlockSpec((N_ACTIONS, HIDDEN), lambda i: (0, 0)),  # w2 resident
            pl.BlockSpec((N_ACTIONS, 1), lambda i: (0, 0)),       # b2 resident
        ],
        out_specs=pl.BlockSpec((N_ACTIONS, tb), lambda i: (0, i)),
        compiler_params=pltpu.CompilerParams(
            dimension_semantics=("parallel",)),  # batch axis sharded on v7x
    )(x_t, w1.astype(jnp.float32), b1_c, w2.astype(jnp.float32), b2_c)

    return y_t[:, :B].T                               # (B, N_ACTIONS)


def init_params(key):
    """Mirror the PyTorch module: weights ~ Normal(0, 0.1), biases ~
    Uniform(-1/sqrt(fan_in), 1/sqrt(fan_in)) (PyTorch Linear default).
    PyTorch layout: weight (out_features, in_features), bias (out_features,)."""
    k1, k2, k3, k4 = jax.random.split(key, 4)
    w1 = 0.1 * jax.random.normal(k1, (HIDDEN, N_STATES), dtype=jnp.float32)
    w2 = 0.1 * jax.random.normal(k2, (N_ACTIONS, HIDDEN), dtype=jnp.float32)
    bound1 = 1.0 / jnp.sqrt(jnp.float32(N_STATES))
    bound2 = 1.0 / jnp.sqrt(jnp.float32(HIDDEN))
    b1 = jax.random.uniform(k3, (HIDDEN,), minval=-bound1, maxval=bound1,
                            dtype=jnp.float32)
    b2 = jax.random.uniform(k4, (N_ACTIONS,), minval=-bound2, maxval=bound2,
                            dtype=jnp.float32)
    return w1, b1, w2, b2


if __name__ == "__main__":
    key = jax.random.PRNGKey(0)
    kx, kp = jax.random.split(key)
    w1, b1, w2, b2 = init_params(kp)

    # Training-style batch (not a multiple of 128): pads to one 256-wide tile,
    # i.e. a single grid step.
    B = 200
    x = jax.random.normal(kx, (B, N_STATES), dtype=jnp.float32)

    actions_value = net_forward(x, w1, b1, w2, b2)
    jax.block_until_ready(actions_value)

    # Pure-JAX reference (same math, PyTorch layout).
    ref = jnp.maximum(x @ w1.T + b1, 0.0) @ w2.T + b2
    assert actions_value.shape == (B, N_ACTIONS)
    assert jnp.allclose(actions_value, ref, atol=1e-5, rtol=1e-5)

    # Small inference-style batch (B=2) exercises the minimum 128-wide tile.
    x_small = jax.random.normal(kx, (2, N_STATES), dtype=jnp.float32)
    out_small = net_forward(x_small, w1, b1, w2, b2)
    jax.block_until_ready(out_small)
    ref_small = jnp.maximum(x_small @ w1.T + b1, 0.0) @ w2.T + b2
    assert out_small.shape == (2, N_ACTIONS)
    assert jnp.allclose(out_small, ref_small, atol=1e-5, rtol=1e-5)

    print("KERNEL_OK")
</pallas_src>

<mosaic_0001>
module attributes {stable_mosaic.version = 11 : i64} {
  func.func @net_kernel(%arg0: i32, %arg1: memref<4x256xf32, #tpu.memory_space<vmem>>, %arg2: memref<60x4xf32, #tpu.memory_space<vmem>>, %arg3: memref<60x1xf32, #tpu.memory_space<vmem>>, %arg4: memref<2x60xf32, #tpu.memory_space<vmem>>, %arg5: memref<2x1xf32, #tpu.memory_space<vmem>>, %arg6: memref<2x256xf32, #tpu.memory_space<vmem>>) attributes {dimension_semantics = [#tpu.dimension_semantics<parallel>], iteration_bounds = array<i64: 1>, scalar_prefetch = 0 : i64, scratch_operands = 0 : i64, tpu.core_type = #tpu.core_type<tc>, window_params = [{transform_indices = @transform_0, window_bounds = array<i64: 4, 256>}, {pipeline_mode = #tpu.pipeline_mode<synchronous>, transform_indices = @transform_1, window_bounds = array<i64: 60, 4>}, {pipeline_mode = #tpu.pipeline_mode<synchronous>, transform_indices = @transform_2, window_bounds = array<i64: 60, 1>}, {pipeline_mode = #tpu.pipeline_mode<synchronous>, transform_indices = @transform_3, window_bounds = array<i64: 2, 60>}, {pipeline_mode = #tpu.pipeline_mode<synchronous>, transform_indices = @transform_4, window_bounds = array<i64: 2, 1>}, {transform_indices = @transform_5, window_bounds = array<i64: 2, 256>}]} {
    %c0 = arith.constant 0 : index
    %c0_0 = arith.constant 0 : index
    %0 = vector.load %arg1[%c0, %c0_0] : memref<4x256xf32, #tpu.memory_space<vmem>>, vector<4x256xf32>
    %c0_1 = arith.constant 0 : index
    %c0_2 = arith.constant 0 : index
    %1 = vector.load %arg2[%c0_1, %c0_2] : memref<60x4xf32, #tpu.memory_space<vmem>>, vector<60x4xf32>
    %c0_3 = arith.constant 0 : index
    %c0_4 = arith.constant 0 : index
    %2 = vector.load %arg3[%c0_3, %c0_4] : memref<60x1xf32, #tpu.memory_space<vmem>>, vector<60x1xf32>
    %3 = vector.extract_strided_slice %1 {offsets = [0, 0], sizes = [60, 1], strides = [1, 1]} : vector<60x4xf32> to vector<60x1xf32>
    %4 = vector.extract_strided_slice %0 {offsets = [0, 0], sizes = [1, 256], strides = [1, 1]} : vector<4x256xf32> to vector<1x256xf32>
    %5 = vector.broadcast %3 : vector<60x1xf32> to vector<60x256xf32>
    %6 = vector.broadcast %4 : vector<1x256xf32> to vector<60x256xf32>
    %7 = arith.mulf %5, %6 : vector<60x256xf32>
    %8 = vector.broadcast %2 : vector<60x1xf32> to vector<60x256xf32>
    %9 = arith.addf %8, %7 : vector<60x256xf32>
    %10 = vector.extract_strided_slice %1 {offsets = [0, 1], sizes = [60, 1], strides = [1, 1]} : vector<60x4xf32> to vector<60x1xf32>
    %11 = vector.extract_strided_slice %0 {offsets = [1, 0], sizes = [1, 256], strides = [1, 1]} : vector<4x256xf32> to vector<1x256xf32>
    %12 = vector.broadcast %10 : vector<60x1xf32> to vector<60x256xf32>
    %13 = vector.broadcast %11 : vector<1x256xf32> to vector<60x256xf32>
    %14 = arith.mulf %12, %13 : vector<60x256xf32>
    %15 = arith.addf %9, %14 : vector<60x256xf32>
    %16 = vector.extract_strided_slice %1 {offsets = [0, 2], sizes = [60, 1], strides = [1, 1]} : vector<60x4xf32> to vector<60x1xf32>
    %17 = vector.extract_strided_slice %0 {offsets = [2, 0], sizes = [1, 256], strides = [1, 1]} : vector<4x256xf32> to vector<1x256xf32>
    %18 = vector.broadcast %16 : vector<60x1xf32> to vector<60x256xf32>
    %19 = vector.broadcast %17 : vector<1x256xf32> to vector<60x256xf32>
    %20 = arith.mulf %18, %19 : vector<60x256xf32>
    %21 = arith.addf %15, %20 : vector<60x256xf32>
    %22 = vector.extract_strided_slice %1 {offsets = [0, 3], sizes = [60, 1], strides = [1, 1]} : vector<60x4xf32> to vector<60x1xf32>
    %23 = vector.extract_strided_slice %0 {offsets = [3, 0], sizes = [1, 256], strides = [1, 1]} : vector<4x256xf32> to vector<1x256xf32>
    %24 = vector.broadcast %22 : vector<60x1xf32> to vector<60x256xf32>
    %25 = vector.broadcast %23 : vector<1x256xf32> to vector<60x256xf32>
    %26 = arith.mulf %24, %25 : vector<60x256xf32>
    %27 = arith.addf %21, %26 : vector<60x256xf32>
    %cst = arith.constant 0.000000e+00 : f32
    %28 = vector.broadcast %cst : f32 to vector<60x256xf32>
    %29 = arith.maximumf %27, %28 : vector<60x256xf32>
    %c0_5 = arith.constant 0 : index
    %c0_6 = arith.constant 0 : index
    %30 = vector.load %arg4[%c0_5, %c0_6] : memref<2x60xf32, #tpu.memory_space<vmem>>, vector<2x60xf32>
    %cst_7 = arith.constant dense<0.000000e+00> : vector<2x256xf32>
    %31 = tpu.matmul %30, %29, %cst_7 {dimension_numbers = #tpu.dot_dimension_numbers<[1], [0], [0], [1], [0, 0, 1, 1], [], []>} : vector<2x60xf32>, vector<60x256xf32>, vector<2x256xf32> -> vector<2x256xf32>
    %c0_8 = arith.constant 0 : index
    %c0_9 = arith.constant 0 : index
    %32 = vector.load %arg5[%c0_8, %c0_9] : memref<2x1xf32, #tpu.memory_space<vmem>>, vector<2x1xf32>
    %33 = vector.broadcast %32 : vector<2x1xf32> to vector<2x256xf32>
    %34 = arith.addf %31, %33 : vector<2x256xf32>
    %c0_10 = arith.constant 0 : index
    %c0_11 = arith.constant 0 : index
    %35 = vector.load %arg6[%c0_10, %c0_11] : memref<2x256xf32, #tpu.memory_space<vmem>>, vector<2x256xf32>
    tpu.vector_store %arg6[%c0_10, %c0_11], %34 {strides = array<i32>} : memref<2x256xf32, #tpu.memory_space<vmem>>, vector<2x256xf32>,
    return
  }
  func.func @transform_0(%arg0: i32) -> (i32, i32) {
    %c0_i32 = arith.constant 0 : i32
    %c0_i32_0 = arith.constant 0 : i32
    return %c0_i32, %arg0 : i32, i32
  }
  func.func @transform_1(%arg0: i32) -> (i32, i32) {
    %c0_i32 = arith.constant 0 : i32
    %c0_i32_0 = arith.constant 0 : i32
    %c0_i32_1 = arith.constant 0 : i32
    return %c0_i32, %c0_i32_0 : i32, i32
  }
  func.func @transform_2(%arg0: i32) -> (i32, i32) {
    %c0_i32 = arith.constant 0 : i32
    %c0_i32_0 = arith.constant 0 : i32
    %c0_i32_1 = arith.constant 0 : i32
    return %c0_i32, %c0_i32_0 : i32, i32
  }
  func.func @transform_3(%arg0: i32) -> (i32, i32) {
    %c0_i32 = arith.constant 0 : i32
    %c0_i32_0 = arith.constant 0 : i32
    %c0_i32_1 = arith.constant 0 : i32
    return %c0_i32, %c0_i32_0 : i32, i32
  }
  func.func @transform_4(%arg0: i32) -> (i32, i32) {
    %c0_i32 = arith.constant 0 : i32
    %c0_i32_0 = arith.constant 0 : i32
    %c0_i32_1 = arith.constant 0 : i32
    return %c0_i32, %c0_i32_0 : i32, i32
  }
  func.func @transform_5(%arg0: i32) -> (i32, i32) {
    %c0_i32 = arith.constant 0 : i32
    %c0_i32_0 = arith.constant 0 : i32
    return %c0_i32, %arg0 : i32, i32
  }
}

</mosaic_0001>

<bundles_post_ra>
// kernel: net_forward.1
= control target key start
LH: loop header
LB: loop body
LE: loop exit
PB: predicated region body
PF: predicated region fallthrough
CT: control target
= control target key end

     0   :  { %v587_v0 = vmov 2   ;;  %v588_v1 = vmov 0   ;;  %v589_v7 = vmov 1   ;;  %v590_v14 = vmov 3   ;;  %s833_s2 = inlined_call_operand.vmem [shape: f32[60,1], index: 2, kind: input, shape index: {}]   ;;  %s834_s1 = inlined_call_operand.vmem [shape: f32[60,4], index: 1, kind: input, shape index: {}]   ;;  %s835_s4 = inlined_call_operand.vmem [shape: f32[2,1], index: 4, kind: input, shape index: {}]   ;;  %s836_s0 = inlined_call_operand.vmem [shape: f32[4,256], index: 0, kind: input, shape index: {}]   ;;  %s837_s3 = inlined_call_operand.vmem [shape: f32[2,60], index: 3, kind: input, shape index: {}]   ;;  %s838_s5 = inlined_call_operand.vmem [shape: f32[2,256], index: 5, kind: output, shape index: {}]  }
   0x1   :  { %571 = vset.pattern.permute.xlu0 %v587_v0  ;;  %563 = vset.pattern.permute.xlu1 %v588_v1  ;;  %v29_v2 = vld [vmem:[%s833_s2] sm:$0xff]  ;;  %v23_v3 = vld [vmem:[%s834_s1 + $0x10] sm:$0xff]  ;;  %v30_v4 = vld [vmem:[%s833_s2 + $0x8] sm:$0xff]  ;;  %v591_v20 = vmov 0.0   ;;  %v78_v29 = vlaneseq  ;;  %vm441_vm0 = vcmask 1043456   ;;  %vm592_vm1 = vmmov 1  }
   0x2   :  { %114 = vperm.xlu1 %563, %v29_v2   ;;  %259 = vperm.xlu0 %571, %v23_v3   ;;  %v21_v5 = vld [vmem:[%s834_s1] sm:$0xff]  ;;  %v22_v6 = vld [vmem:[%s834_s1 + $0x8] sm:$0xff]  ;;  %v24_v8 = vld [vmem:[%s834_s1 + $0x18] sm:$0xff]  ;;  %vm437_vm3 = vcmask 490496  }
   0x3   :  { %v31_v9 = vld [vmem:[%s833_s2 + $0x10] sm:$0xff]  ;;  %v34_v10 = vld [vmem:[%s833_s2 + $0x28] sm:$0xff]  ;;  %v28_v11 = vld [vmem:[%s834_s1 + $0x38] sm:$0xf]  ;;  %512 = vmatprep.mubr.f32.mxu0 %v591_v20  ;;  %v79_v32 = vshrl.u32 %v78_v29, 7 }
   0x4   :  { %v32_v12 = vld [vmem:[%s833_s2 + $0x18] sm:$0xff]  ;;  %v35_v13 = vld [vmem:[%s833_s2 + $0x30] sm:$0xff]  ;;  %v25_v16 = vld [vmem:[%s834_s1 + $0x20] sm:$0xff] }
   0x5   :  { %v27_v15 = vld [vmem:[%s834_s1 + $0x30] sm:$0xff]  ;;  %v26_v17 = vld [vmem:[%s834_s1 + $0x28] sm:$0xff]  ;;  %v33_v18 = vld [vmem:[%s833_s2 + $0x20] sm:$0xff]  ;;  %v80_v35 = vsub.s32 0, %v79_v32  ;;  %v84_v36 = vsub.s32 4, %v79_v32  ;;  %v202_v42 = vsub.s32 1, %v79_v32 }
   0x6   :  { %119 = vperm.xlu1 %563, %v30_v4   ;;  %572 = vset.pattern.permute.xlu0 %v588_v1  ;;  %v36_v19 = vld [vmem:[%s833_s2 + $0x38] sm:$0xf]  ;;  %v431_v23 = vld [vmem:[%s835_s4] sm:$0x3]  ;;  %v206_v43 = vsub.s32 5, %v79_v32  ;;  %v284_v45 = vsub.s32 2, %v79_v32  ;;  %vm552_vm2 = vmpackc.low %vm441_vm0, %vm592_vm1 }
   0x7   :  { %39 = vperm.xlu0 %572, %v21_v5   ;;  %v20_v37 = vld [vmem:[%s836_s0] sm:$0xff]  ;;  %v288_v46 = vsub.s32 6, %v79_v32  ;;  %v366_v52 = vsub.s32 3, %v79_v32  ;;  %v370_v53 = vsub.s32 7, %v79_v32 }
   0x8   :  { %v81_v40 = vrot.slane %v20_v37, %v80_v35  ;;  %v85_v41 = vrot.slane %v20_v37, %v84_v36  ;;  %v203_v50 = vrot.slane %v20_v37, %v202_v42  ;;  %v207_v51 = vrot.slane %v20_v37, %v206_v43 }
   0x9   :  { %v285_v54 = vrot.slane %v20_v37, %v284_v45  ;;  %v289_v55 = vrot.slane %v20_v37, %v288_v46 }
   0xa   :  { %564 = vset.pattern.permute.xlu1 %v589_v7  ;;  %v707_v48 = vrot.slane %v81_v40, %v80_v35  ;;  %v709_v49 = vrot.slane %v85_v41, %v80_v35  ;;  %v715_v59 = vrot.slane %v203_v50, %v202_v42  ;;  %v717_v60 = vrot.slane %v207_v51, %v202_v42 }
   0xb   :  { %173 = vperm.xlu1 %564, %v22_v6   ;;  %44 = vperm.xlu0 %572, %v22_v6   ;;  %v723_v4 = vrot.slane %v285_v54, %v284_v45 }
   0xf   :  { %565 = vset.pattern.permute.xlu1 %v588_v1  ;;  %54 = vperm.xlu0 %572, %v24_v8  }
  0x10   :  { %49 = vperm.xlu1 %565, %v23_v3  }
  0x13   :  { %124 = vperm.xlu0 %572, %v31_v9  }
  0x14   :  { %566 = vset.pattern.permute.xlu1 %v587_v0 }
  0x15   :  { %251 = vperm.xlu1 %566, %v21_v5  }
  0x17   :  { %139 = vperm.xlu0 %572, %v34_v10  }
  0x19   :  { %255 = vperm.xlu1 %566, %v22_v6  }
  0x1b   :  { %74 = vperm.xlu0 %572, %v28_v11  }
  0x1d   :  { %567 = vset.pattern.permute.xlu1 %v588_v1 }
  0x1e   :  { %129 = vperm.xlu1 %567, %v32_v12  }
  0x1f   :  { %144 = vperm.xlu0 %572, %v35_v13  }
  0x22   :  { %568 = vset.pattern.permute.xlu1 %v589_v7 }
  0x23   :  { %579 = vset.pattern.permute.xlu0 %v589_v7  ;;  %181 = vperm.xlu1 %568, %v24_v8  }
  0x24   :  { %169 = vperm.xlu0 %579, %v21_v5  }
  0x27   :  { %569 = vset.pattern.permute.xlu1 %v590_v14 }
  0x28   :  { %177 = vperm.xlu0 %579, %v23_v3   ;;  %333 = vperm.xlu1 %569, %v21_v5   ;;  %v725_v5 = vrot.slane %v289_v55, %v284_v45 }
  0x2c   :  { %193 = vperm.xlu0 %579, %v27_v15   ;;  %570 = vset.pattern.permute.xlu1 %v588_v1 }
  0x2d   :  { %59 = vperm.xlu1 %570, %v25_v16  }
  0x30   :  { %581 = vset.pattern.permute.xlu0 %v590_v14 }
  0x31   :  { %337 = vperm.xlu0 %581, %v22_v6   ;;  %64 = vperm.xlu1 %570, %v26_v17  }
  0x35   :  { %341 = vperm.xlu0 %581, %v23_v3   ;;  %573 = vset.pattern.permute.xlu1 %v587_v0 }
  0x36   :  { %263 = vperm.xlu1 %573, %v24_v8  }
  0x39   :  { %353 = vperm.xlu0 %581, %v26_v17  }
  0x3a   :  { %574 = vset.pattern.permute.xlu1 %v588_v1 }
  0x3b   :  { %134 = vperm.xlu1 %574, %v33_v18  }
  0x3d   :  { %357 = vperm.xlu0 %581, %v27_v15  }
  0x3f   :  { %575 = vset.pattern.permute.xlu1 %v589_v7 }
  0x40   :  { %185 = vperm.xlu1 %575, %v25_v16  }
  0x41   :  { %586 = vset.pattern.permute.xlu0 %v588_v1 }
  0x42   :  { %434 = vperm.xlu0 %586, %v431_v23  }
  0x44   :  { %189 = vperm.xlu1 %575, %v26_v17  }
  0x48   :  { %576 = vset.pattern.permute.xlu1 %v590_v14 }
  0x49   :  { %345 = vperm.xlu1 %576, %v24_v8  }
  0x4d   :  { %577 = vset.pattern.permute.xlu1 %v588_v1 }
  0x4e   :  { %69 = vperm.xlu1 %577, %v27_v15  }
  0x52   :  { %578 = vset.pattern.permute.xlu1 %v587_v0 }
  0x53   :  { %267 = vperm.xlu1 %578, %v25_v16  }
  0x57   :  { %271 = vperm.xlu1 %578, %v26_v17  }
  0x5b   :  { %580 = vset.pattern.permute.xlu1 %v588_v1  ;;  %v371_v1 = vrot.slane %v20_v37, %v370_v53 }
  0x5c   :  { %149 = vperm.xlu1 %580, %v36_v19  }
  0x5d   :  { %v729_v13 = vrot.slane %v371_v1, %v366_v52 }
  0x60   :  { %582 = vset.pattern.permute.xlu1 %v589_v7 }
  0x61   :  { %197 = vperm.xlu1 %582, %v28_v11  }
  0x65   :  { %583 = vset.pattern.permute.xlu1 %v590_v14 }
  0x66   :  { %349 = vperm.xlu1 %583, %v25_v16  }
  0x6a   :  { %584 = vset.pattern.permute.xlu1 %v587_v0  ;;  %v367_v0 = vrot.slane %v20_v37, %v366_v52 }
  0x6b   :  { %275 = vperm.xlu1 %584, %v27_v15  }
  0x6c   :  { %v727_v12 = vrot.slane %v367_v0, %v366_v52 }
  0x6f   :  { %279 = vperm.xlu1 %584, %v28_v11  }
  0x73   :  { %585 = vset.pattern.permute.xlu1 %v590_v14 }
  0x74   :  { %361 = vperm.xlu1 %585, %v28_v11  }
  0x81   :  { %v115_v21 = vpop.permute.xlu1 %114  ;;  %v685_v22 = vpop.permute.xlu0 %259 }
  0x85   :  { %v120_v24 = vpop.permute.xlu1 %119 }
  0x86   :  { %v40_v25 = vpop.permute.xlu0 %39 }
  0x87   :  { %v96_v57 = vmul.f32 %v707_v48, %v40_v25  ;;  %v97_v58 = vmul.f32 %v709_v49, %v40_v25 }
  0x89   :  { %v152_v6 = vadd.f32 %v115_v21, %v96_v57  ;;  %v153_v7 = vadd.f32 %v115_v21, %v97_v58 }
  0x8a   :  { %v174_v26 = vpop.permute.xlu1 %173  ;;  %v45_v27 = vpop.permute.xlu0 %44 }
  0x8b   :  { %v98_v2 = vmul.f32 %v707_v48, %v45_v27  ;;  %v99_v3 = vmul.f32 %v709_v49, %v45_v27  ;;  %v220_v19 = vmul.f32 %v715_v59, %v174_v26  ;;  %v221_v20 = vmul.f32 %v717_v60, %v174_v26 }
  0x8d   :  { %v154_v14 = vadd.f32 %v120_v24, %v98_v2  ;;  %v155_v15 = vadd.f32 %v120_v24, %v99_v3 }
  0x8e   :  { %v690_v28 = vpop.permute.xlu0 %54 }
  0x8f   :  { %v692_v30 = vpop.permute.xlu1 %49  ;;  %v236_v35 = vadd.f32 %v220_v19, %v154_v14 }
  0x92   :  { %v694_v31 = vpop.permute.xlu0 %124 }
  0x94   :  { %v252_v33 = vpop.permute.xlu1 %251 }
  0x95   :  { %v300_v16 = vmul.f32 %v723_v4, %v252_v33  ;;  %v301_v17 = vmul.f32 %v725_v5, %v252_v33  ;;  %v237_v33 = vadd.f32 %v221_v20, %v155_v15 }
  0x96   :  { %v696_v34 = vpop.permute.xlu0 %139 }
  0x98   :  { %v256_v38 = vpop.permute.xlu1 %255 }
  0x99   :  { %v302_v21 = vmul.f32 %v723_v4, %v256_v38  ;;  %v303_v23 = vmul.f32 %v725_v5, %v256_v38 }
  0x9a   :  { %v701_v39 = vpop.permute.xlu0 %74 }
  0x9b   :  { %v318_v36 = vadd.f32 %v302_v21, %v236_v35  ;;  %v319_v37 = vadd.f32 %v303_v23, %v237_v33 }
  0x9d   :  { %v703_v44 = vpop.permute.xlu1 %129 }
  0x9e   :  { %v705_v47 = vpop.permute.xlu0 %144 }
  0xa2   :  { %v711_v56 = vpop.permute.xlu1 %181 }
  0xa3   :  { %v170_v61 = vpop.permute.xlu0 %169  ;;  %v224_v14 = vmul.f32 %v715_v59, %v711_v56 }
  0xa4   :  { %v218_v62 = vmul.f32 %v715_v59, %v170_v61  ;;  %v219_v63 = vmul.f32 %v717_v60, %v170_v61  ;;  %v100_v61 = vmul.f32 %v707_v48, %v692_v30 }
  0xa6   :  { %v234_v10 = vadd.f32 %v218_v62, %v152_v6  ;;  %v235_v11 = vadd.f32 %v219_v63, %v153_v7  ;;  %v101_v62 = vmul.f32 %v709_v49, %v692_v30  ;;  %v156_v2 = vadd.f32 %v694_v31, %v100_v61 }
  0xa7   :  { %v178_v8 = vpop.permute.xlu0 %177  ;;  %v334_v9 = vpop.permute.xlu1 %333  ;;  %v102_v6 = vmul.f32 %v707_v48, %v690_v28  ;;  %v103_v7 = vmul.f32 %v709_v49, %v690_v28  ;;  %v304_v30 = vmul.f32 %v723_v4, %v685_v22 }
  0xa8   :  { %v316_v27 = vadd.f32 %v300_v16, %v234_v10  ;;  %v382_v29 = vmul.f32 %v727_v12, %v334_v9  ;;  %v383_v24 = vmul.f32 %v729_v13, %v334_v9  ;;  %v317_v32 = vadd.f32 %v301_v17, %v235_v11 }
  0xa9   :  { %v222_v63 = vmul.f32 %v715_v59, %v178_v8  ;;  %v223_v0 = vmul.f32 %v717_v60, %v178_v8  ;;  %v157_v3 = vadd.f32 %v694_v31, %v101_v62  ;;  %v305_v10 = vmul.f32 %v725_v5, %v685_v22 }
  0xaa   :  { %v398_v26 = vadd.f32 %v382_v29, %v316_v27  ;;  %v399_v43 = vadd.f32 %v383_v24, %v317_v32  ;;  %v225_v31 = vmul.f32 %v717_v60, %v711_v56  ;;  %v158_v17 = vadd.f32 %v703_v44, %v102_v6 }
  0xab   :  { %v733_v18 = vpop.permute.xlu0 %193  ;;  %v238_v8 = vadd.f32 %v222_v63, %v156_v2  ;;  %v239_v11 = vadd.f32 %v223_v0, %v157_v3  ;;  %v159_v19 = vadd.f32 %v703_v44, %v103_v7 }
  0xac   :  { %v739_v25 = vpop.permute.xlu1 %59  ;;  %v415_v51 = vmax.f32 %v399_v43, 0.0  ;;  %v414_v53 = vmax.f32 %v398_v26, 0.0  ;;  %v240_v27 = vadd.f32 %v224_v14, %v158_v17 }
  0xad   :  { %v320_v21 = vadd.f32 %v304_v30, %v238_v8  ;;  %v321_v23 = vadd.f32 %v305_v10, %v239_v11  ;;  %v241_v29 = vadd.f32 %v225_v31, %v159_v19  ;;  %v104_v8 = vmul.f32 %v707_v48, %v739_v25 }
  0xae   :  { %v105_v11 = vmul.f32 %v709_v49, %v739_v25 }
  0xb0   :  { %v338_v40 = vpop.permute.xlu0 %337  ;;  %v743_v41 = vpop.permute.xlu1 %64 }
  0xb1   :  { %v384_v42 = vmul.f32 %v727_v12, %v338_v40  ;;  %v385_v38 = vmul.f32 %v729_v13, %v338_v40  ;;  %v106_v2 = vmul.f32 %v707_v48, %v743_v41 }
  0xb3   :  { %v400_v45 = vadd.f32 %v384_v42, %v318_v36  ;;  %v401_v46 = vadd.f32 %v385_v38, %v319_v37 }
  0xb4   :  { %v342_v9 = vpop.permute.xlu0 %341 }
  0xb5   :  { %v264_v50 = vpop.permute.xlu1 %263  ;;  %v417_v52 = vmax.f32 %v401_v46, 0.0  ;;  %v416_v54 = vmax.f32 %v400_v45, 0.0  ;;  %v386_v16 = vmul.f32 %v727_v12, %v342_v9  ;;  %v387_v28 = vmul.f32 %v729_v13, %v342_v9 }
  0xb6   :  { %v306_v20 = vmul.f32 %v723_v4, %v264_v50  ;;  %v307_v22 = vmul.f32 %v725_v5, %v264_v50  ;;  %v230_v46 = vmul.f32 %v715_v59, %v733_v18  ;;  %v231_v50 = vmul.f32 %v717_v60, %v733_v18 }
  0xb7   :  { %v539_v55 = vpack.c.bf16 %v417_v52, %v415_v51  ;;  %v541_v57 = vpack.c.bf16 %v416_v54, %v414_v53  ;;  %v402_v24 = vadd.f32 %v386_v16, %v320_v21  ;;  %v403_v32 = vadd.f32 %v387_v28, %v321_v23 }
  0xb8   :  { %v322_v35 = vadd.f32 %v306_v20, %v240_v27  ;;  %v323_v33 = vadd.f32 %v307_v22, %v241_v29  ;;  %v107_v18 = vmul.f32 %v709_v49, %v743_v41  ;;  %v162_v9 = vadd.f32 %v696_v34, %v106_v2  ;;  %v354_v31 = vpop.permute.xlu0 %353 }
  0xb9   :  { %540 = vmatprep.subr.bf16.mxu0 %v539_v55  ;;  %v418_v44 = vmax.f32 %v402_v24, 0.0  ;;  %v419_v42 = vmax.f32 %v403_v32, 0.0  ;;  %v392_v21 = vmul.f32 %v727_v12, %v354_v31  ;;  %v393_v23 = vmul.f32 %v729_v13, %v354_v31 }
  0xba   :  { %v747_v58 = vpop.permute.xlu1 %134  ;;  %542 = vmatpush1.bf16.msra.mxu0 %v541_v57 }
  0xbb   :  { %v160_v28 = vadd.f32 %v747_v58, %v104_v8  ;;  %v161_v17 = vadd.f32 %v747_v58, %v105_v11 }
  0xbf   :  { %v755_v1 = vpop.permute.xlu1 %185 }
  0xc0   :  { %v226_v41 = vmul.f32 %v715_v59, %v755_v1  ;;  %v227_v14 = vmul.f32 %v717_v60, %v755_v1 }
  0xc2   :  { %v242_v27 = vadd.f32 %v226_v41, %v160_v28  ;;  %v243_v1 = vadd.f32 %v227_v14, %v161_v17 }
  0xc3   :  { %v190_v15 = vpop.permute.xlu1 %189 }
  0xc4   :  { %v228_v6 = vmul.f32 %v715_v59, %v190_v15  ;;  %v229_v7 = vmul.f32 %v717_v60, %v190_v15 }
  0xc6   :  { %v244_v15 = vadd.f32 %v228_v6, %v162_v9 }
  0xc8   :  { %v346_v56 = vpop.permute.xlu1 %345 }
  0xc9   :  { %v388_v36 = vmul.f32 %v727_v12, %v346_v56  ;;  %v389_v37 = vmul.f32 %v729_v13, %v346_v56 }
  0xcb   :  { %v404_v40 = vadd.f32 %v388_v36, %v322_v35  ;;  %v405_v26 = vadd.f32 %v389_v37, %v323_v33 }
  0xcd   :  { %v420_v38 = vmax.f32 %v404_v40, 0.0  ;;  %v421_v43 = vmax.f32 %v405_v26, 0.0  ;;  %v70_v45 = vpop.permute.xlu1 %69 }
  0xce   :  { %v108_v51 = vmul.f32 %v707_v48, %v70_v45  ;;  %v109_v52 = vmul.f32 %v709_v49, %v70_v45 }
  0xcf   :  { %v543_v53 = vpack.c.bf16 %v421_v43, %v419_v42  ;;  %v545_v54 = vpack.c.bf16 %v420_v38, %v418_v44 }
  0xd0   :  { %v164_v55 = vadd.f32 %v705_v47, %v108_v51  ;;  %v165_v57 = vadd.f32 %v705_v47, %v109_v52  ;;  %v163_v47 = vadd.f32 %v696_v34, %v107_v18  ;;  %v110_v51 = vmul.f32 %v707_v48, %v701_v39 }
  0xd1   :  { %544 = vmatprep.subr.bf16.mxu0 %v543_v53  ;;  %v111_v52 = vmul.f32 %v709_v49, %v701_v39 }
  0xd2   :  { %v268_v61 = vpop.permute.xlu1 %267  ;;  %546 = vmatpush1.bf16.msra.mxu0 %v545_v54  ;;  %v246_v62 = vadd.f32 %v230_v46, %v164_v55  ;;  %v247_v63 = vadd.f32 %v231_v50, %v165_v57  ;;  %v245_v16 = vadd.f32 %v229_v7, %v163_v47  ;;  %v358_v55 = vpop.permute.xlu0 %357 }
  0xd3   :  { %v308_v19 = vmul.f32 %v723_v4, %v268_v61  ;;  %v309_v20 = vmul.f32 %v725_v5, %v268_v61  ;;  %v394_v48 = vmul.f32 %v727_v12, %v358_v55  ;;  %v395_v39 = vmul.f32 %v729_v13, %v358_v55 }
  0xd5   :  { %v324_v29 = vadd.f32 %v308_v19, %v242_v27  ;;  %v325_v24 = vadd.f32 %v309_v20, %v243_v1 }
  0xd6   :  { %v272_v0 = vpop.permute.xlu1 %271 }
  0xd7   :  { %v310_v30 = vmul.f32 %v723_v4, %v272_v0  ;;  %v311_v10 = vmul.f32 %v725_v5, %v272_v0 }
  0xd9   :  { %v326_v22 = vadd.f32 %v310_v30, %v244_v15  ;;  %v327_v25 = vadd.f32 %v311_v10, %v245_v16  ;;  %v430_v15 = vld [vmem:[%s837_s3] sm:$0x3] }
  0xdb   :  { %v150_v3 = vpop.permute.xlu1 %149  ;;  %v408_v56 = vadd.f32 %v392_v21, %v326_v22  ;;  %v409_v35 = vadd.f32 %v393_v23, %v327_v25 }
  0xdc   :  { %v166_v2 = vadd.f32 %v150_v3, %v110_v51  ;;  %v167_v18 = vadd.f32 %v150_v3, %v111_v52 }
  0xdd   :  { %v424_v40 = vmax.f32 %v408_v56, 0.0  ;;  %v425_v26 = vmax.f32 %v409_v35, 0.0 }
  0xe0   :  { %v198_v34 = vpop.permute.xlu1 %197 }
  0xe1   :  { %v232_v53 = vmul.f32 %v715_v59, %v198_v34  ;;  %v233_v54 = vmul.f32 %v717_v60, %v198_v34 }
  0xe3   :  { %v248_v49 = vadd.f32 %v232_v53, %v166_v2  ;;  %v249_v59 = vadd.f32 %v233_v54, %v167_v18 }
  0xe5   :  { %v350_v32 = vpop.permute.xlu1 %349 }
  0xe6   :  { %v390_v33 = vmul.f32 %v727_v12, %v350_v32  ;;  %v391_v58 = vmul.f32 %v729_v13, %v350_v32 }
  0xe8   :  { %v406_v36 = vadd.f32 %v390_v33, %v324_v29  ;;  %v407_v37 = vadd.f32 %v391_v58, %v325_v24 }
  0xea   :  { %v422_v44 = vmax.f32 %v406_v36, 0.0  ;;  %v423_v42 = vmax.f32 %v407_v37, 0.0  ;;  %v276_v38 = vpop.permute.xlu1 %275 }
  0xeb   :  { %v312_v43 = vmul.f32 %v723_v4, %v276_v38  ;;  %v313_v45 = vmul.f32 %v725_v5, %v276_v38 }
  0xec   :  { %v547_v46 = vpack.c.bf16 %v425_v26, %v423_v42  ;;  %v549_v50 = vpack.c.bf16 %v424_v40, %v422_v44 }
  0xed   :  { %v328_v61 = vadd.f32 %v312_v43, %v246_v62  ;;  %v329_v0 = vadd.f32 %v313_v45, %v247_v63 }
  0xee   :  { %v280_v57 = vpop.permute.xlu1 %279  ;;  %548 = vmatprep.subr.bf16.mxu0 %v547_v46 }
  0xef   :  { %550 = vmatpush1.bf16.msra.mxu0 %v549_v50  ;;  %v314_v6 = vmul.f32 %v723_v4, %v280_v57  ;;  %v315_v7 = vmul.f32 %v725_v5, %v280_v57  ;;  %v410_v9 = vadd.f32 %v394_v48, %v328_v61  ;;  %v411_v60 = vadd.f32 %v395_v39, %v329_v0 }
  0xf1   :  { %v330_v30 = vadd.f32 %v314_v6, %v248_v49  ;;  %v331_v10 = vadd.f32 %v315_v7, %v249_v59  ;;  %v426_v4 = vmax.f32 %v410_v9, 0.0  ;;  %v427_v5 = vmax.f32 %v411_v60, 0.0 }
  0xf3   :  { %v362_v47 = vpop.permute.xlu1 %361 }
  0xf4   :  { %v396_v62 = vmul.f32 %v727_v12, %v362_v47  ;;  %v397_v63 = vmul.f32 %v729_v13, %v362_v47  ;;  %v435_v12 = vpop.permute.xlu0 %434 }
  0xf6   :  { %v412_v3 = vadd.f32 %v396_v62, %v330_v30  ;;  %v413_v8 = vadd.f32 %v397_v63, %v331_v10 }
  0xf8   :  { %v428_v11 = vmax.f32 %v412_v3, 0.0  ;;  %v429_v41 = vmax.f32 %v413_v8, 0.0 }
  0xfa   :  { %v551_v14 = vpack.c.bf16 %v429_v41, %v427_v5  ;;  %v554_v31 = vpack.c.bf16 %v428_v11, %v426_v4 }
  0xfc   :  { %553 = vmatprep.subr.msk.bf16.mxu0 %vm552_vm2, %v551_v14 }
  0xfd   :  { %556 = vmatpush1.bf16.msk.msra.mxu0 %vm552_vm2, %v554_v31 }
 0x100   :  { %537 = vmatmul.mubr.msk.f32.vlgmr.msra.gmra.mrb[0].mxu0 %vm437_vm3, %v430_v15 }
 0x1d3   :  { %v514_v13 = vpop.f32.mrb[0].mxu0 }
 0x1d4   :  { %v515_v16 = vadd.f32 %v514_v13, %v435_v12  ;;  %v516_v34 = vpop.f32.mrb[1].mxu0 }
 0x1d5   :  { %v517_v28 = vadd.f32 %v516_v34, %v435_v12 }
 0x1d7   :  { %v521_v17 = vcombine.low %v515_v16, %v517_v28 }
 0x1d9   :  { %538 = vst.sshfl [vmem:[%s838_s5] sm:$0x33 pattern:$0x76325410] %v521_v17 }

</bundles_post_ra>
